<compile_context>
chip_gen: v7x
topology: tpu7x:2x2x1
jax: 0.10.0
libtpu: 0.0.40
codegen_flags: <defaults>
</compile_context>

<pallas_src>
import functools

import jax
import jax.numpy as jnp
from jax import lax
from jax.experimental import pallas as pl
from jax.experimental.pallas import tpu as pltpu


# ----------------------------- config (small shapes) -----------------------------
B = 2            # batch
C_IN = 4         # input channels
H = W = 16       # spatial
F_FEAT = 32      # feature-extractor output channels (== flattened feature dim D)
KSIZE = 3        # conv kernel
N_CLASS = 4      # opt['n_class']
N_ENSEMBLE = 3   # opt['n_ensemble']
HID = 32         # SmallMLP hidden width

KDIM = KSIZE * KSIZE * C_IN        # im2col contraction dim (36)
KAUG = KDIM + 1                    # + ones column (conv bias folded into the matmul)
ROWS = B * H * W                   # im2col rows (512)
CHUNK = 128                        # conv rows per step (bounds live f32 intermediate)
NCHUNK = ROWS // CHUNK             # 4
EHID = N_ENSEMBLE * HID            # 96
EC = N_ENSEMBLE * N_CLASS          # 12
OUT_LANES = 128                    # single lane-dense merged output block
H_OFF = 64                         # feat h lands at lanes [64, 96)


# ----------------------------- Pallas kernel -----------------------------
def ensemble_fused_kernel(p_ref, cw_ref, pm_ref, w1_ref, w2_ref, out_ref):
    """Entire forward pass in one kernel: chunked conv+ReLU+avg-pool, then all MLP heads."""

    # ---- conv (im2col matmul, bias folded as last weight row) + ReLU + pooled accumulation ----
    def body(i, acc):
        conv = jnp.dot(p_ref[i], cw_ref[...], preferred_element_type=jnp.float32)
        conv = jnp.maximum(conv, 0.0).astype(jnp.bfloat16)                  # (CHUNK, F) bf16
        # bf16 pooling matmul: pm entries are 0 and 1/256 (exact in bf16); f32 accumulation.
        return acc + jnp.dot(pm_ref[i], conv, preferred_element_type=jnp.float32)

    feat = lax.fori_loop(0, NCHUNK, body,
                         jnp.zeros((B, F_FEAT), jnp.float32), unroll=True)  # (B, F) f32
    feat_bf = feat.astype(jnp.bfloat16)

    # ---- all ensemble heads at once (W1 concatenated, bias stored as the last weight row) ----
    hid = jnp.dot(feat_bf, w1_ref[:F_FEAT, :], preferred_element_type=jnp.float32)
    hid = hid + w1_ref[F_FEAT:F_FEAT + 1, :].astype(jnp.float32)
    hid = jnp.maximum(hid, 0.0).astype(jnp.bfloat16)                        # (B, E*HID) bf16

    # ---- second layers as one block-diagonal matmul (bias as last weight row) ----
    y = jnp.dot(hid, w2_ref[:EHID, :], preferred_element_type=jnp.float32)
    y = y + w2_ref[EHID:EHID + 1, :].astype(jnp.float32)                    # (B, E*C) f32

    # ---- single lane-dense (B, 128) output: one unmasked store, one output DMA ----
    out_ref[...] = jnp.concatenate(
        [y,
         jnp.zeros((B, H_OFF - EC), jnp.float32),
         feat,
         jnp.zeros((B, OUT_LANES - H_OFF - F_FEAT), jnp.float32)],
        axis=-1)


# ----------------------------- JAX glue -----------------------------
def im2col(x_nhwc, k=KSIZE):
    """SAME-padded 3x3 patch extraction; returns [B*H*W, k*k*C]."""
    b, h, w, c = x_nhwc.shape
    p = k // 2
    xp = jnp.pad(x_nhwc, ((0, 0), (p, p), (p, p), (0, 0)))
    cols = []
    for dy in range(k):
        for dx in range(k):
            cols.append(xp[:, dy:dy + h, dx:dx + w, :])
    patches = jnp.concatenate(cols, axis=-1)          # [B, H, W, k*k*C]
    return patches.reshape(b * h * w, k * k * c)


def _pool_matrix():
    """(NCHUNK, B, CHUNK) bf16 pooling matrix implementing global average pool as chunked matmuls."""
    owner = jnp.arange(ROWS, dtype=jnp.int32) // (H * W)
    onehot = (owner[None, :] == jnp.arange(B, dtype=jnp.int32)[:, None]).astype(jnp.float32)
    pm = onehot / float(H * W)                                    # entries 0 and 1/256 (exact in bf16)
    return pm.reshape(B, NCHUNK, CHUNK).transpose(1, 0, 2).astype(jnp.bfloat16)


@functools.partial(jax.jit, static_argnames=("return_h",))
def ensemble_forward(x_nchw, params, return_h=False):
    # layout: accept NCHW (PyTorch convention), compute in NHWC.
    x_nhwc = jnp.transpose(x_nchw, (0, 2, 3, 1))

    # im2col + ones column (folds conv bias into the matmul); chunked along rows for the kernel.
    patches = im2col(x_nhwc)
    patches = jnp.concatenate([patches, jnp.ones((ROWS, 1), patches.dtype)], axis=-1)
    patches = patches.reshape(NCHUNK, CHUNK, KAUG).astype(jnp.bfloat16)       # (4, 128, 37)

    # weight prep (tiny arrays, fused by XLA): biases become the last row of each weight matrix.
    cw = jnp.concatenate([params["conv_w"], params["conv_b"]], axis=0).astype(jnp.bfloat16)  # (37, F)
    pm = _pool_matrix()                                                                       # (4, B, 128)
    w1c = jnp.transpose(params["w1"], (1, 0, 2)).reshape(F_FEAT, EHID)
    w1a = jnp.concatenate([w1c, params["b1"].reshape(1, EHID)], axis=0).astype(jnp.bfloat16)  # (F+1, E*HID)
    eye = jnp.eye(N_ENSEMBLE, dtype=params["w2"].dtype)
    w2bd = jnp.einsum("ehc,ef->ehfc", params["w2"], eye).reshape(EHID, EC)
    w2a = jnp.concatenate([w2bd, params["b2"].reshape(1, EC)], axis=0).astype(jnp.bfloat16)   # (E*HID+1, E*C)

    flops = (2 * ROWS * KAUG * F_FEAT        # conv matmul
             + 2 * B * ROWS * F_FEAT         # pooling matmul
             + 2 * B * (F_FEAT + 1) * EHID   # head layer 1
             + 2 * B * (EHID + 1) * EC)      # head layer 2
    bytes_accessed = (patches.size * 2 + cw.size * 2 + pm.size * 2
                      + w1a.size * 2 + w2a.size * 2 + B * OUT_LANES * 4)

    out = pl.pallas_call(
        ensemble_fused_kernel,
        out_shape=jax.ShapeDtypeStruct((B, OUT_LANES), jnp.float32),
        grid=(1,),
        in_specs=[
            pl.BlockSpec((NCHUNK, CHUNK, KAUG), lambda i: (0, 0, 0)),
            pl.BlockSpec((KAUG, F_FEAT), lambda i: (0, 0)),
            pl.BlockSpec((NCHUNK, B, CHUNK), lambda i: (0, 0, 0)),
            pl.BlockSpec((F_FEAT + 1, EHID), lambda i: (0, 0)),
            pl.BlockSpec((EHID + 1, EC), lambda i: (0, 0)),
        ],
        out_specs=pl.BlockSpec((B, OUT_LANES), lambda i: (0, 0)),
        compiler_params=pltpu.CompilerParams(
            dimension_semantics=("arbitrary",),
            # let the im2col producer fuse into the pallas input (avoids an HBM round-trip).
            allow_input_fusion=[True, False, False, False, False],
        ),
        cost_estimate=pl.CostEstimate(flops=flops, transcendentals=0,
                                      bytes_accessed=bytes_accessed),
    )(patches, cw, pm, w1a, w2a)

    y = out[:, :EC]
    h = out[:, H_OFF:H_OFF + F_FEAT]
    if return_h:
        return y, h
    return y


def reference_forward(x_nchw, params):
    """Pure-JAX f32 reference of the same (simplified) architecture."""
    x_nhwc = jnp.transpose(x_nchw, (0, 2, 3, 1))
    p = im2col(x_nhwc)
    conv = jnp.maximum(p @ params["conv_w"] + params["conv_b"], 0.0)
    h = conv.reshape(B, H * W, F_FEAT).mean(axis=1)
    ys = []
    for e in range(N_ENSEMBLE):
        hid = jnp.maximum(h @ params["w1"][e] + params["b1"][e], 0.0)
        ys.append(hid @ params["w2"][e] + params["b2"][e])
    return jnp.concatenate(ys, axis=-1), h


def init_params(key):
    k1, k2, k3, k4, k5, k6 = jax.random.split(key, 6)
    conv_w = jax.random.normal(k1, (KDIM, F_FEAT), jnp.float32) / jnp.sqrt(KDIM)
    conv_b = jax.random.normal(k2, (1, F_FEAT), jnp.float32) * 0.01
    w1 = jax.random.normal(k3, (N_ENSEMBLE, F_FEAT, HID), jnp.float32) / jnp.sqrt(F_FEAT)
    b1 = jax.random.normal(k4, (N_ENSEMBLE, 1, HID), jnp.float32) * 0.01
    w2 = jax.random.normal(k5, (N_ENSEMBLE, HID, N_CLASS), jnp.float32) / jnp.sqrt(HID)
    b2 = jax.random.normal(k6, (N_ENSEMBLE, 1, N_CLASS), jnp.float32) * 0.01
    return dict(conv_w=conv_w, conv_b=conv_b, w1=w1, b1=b1, w2=w2, b2=b2)


if __name__ == "__main__":
    key = jax.random.PRNGKey(0)
    kx, kp = jax.random.split(key)
    x = jax.random.normal(kx, (B, C_IN, H, W), jnp.float32)   # NCHW like PyTorch
    params = init_params(kp)

    y = ensemble_forward(x, params)
    y = jax.block_until_ready(y)
    y2, h = ensemble_forward(x, params, return_h=True)
    y2, h = jax.block_until_ready((y2, h))

    assert y.shape == (B, N_CLASS * N_ENSEMBLE), y.shape
    assert h.shape == (B, F_FEAT), h.shape
    assert y.dtype == jnp.float32
    assert bool(jnp.all(jnp.isfinite(y))) and bool(jnp.all(jnp.isfinite(h)))
    assert bool(jnp.allclose(y, y2)), "return_h variants disagree"

    # loose-tolerance check vs pure-JAX f32 reference (kernel matmuls use bf16 operands / f32 acc)
    y_ref, h_ref = reference_forward(x, params)
    assert bool(jnp.allclose(y, y_ref, rtol=1e-1, atol=1e-1)), "y mismatch vs reference"
    assert bool(jnp.allclose(h, h_ref, rtol=1e-1, atol=1e-1)), "h mismatch vs reference"

    print("KERNEL_OK")
</pallas_src>

<mosaic_0001>
module attributes {stable_mosaic.version = 11 : i64} {
  func.func @ensemble_fused_kernel(%arg0: i32, %arg1: memref<4x128x37xbf16, #tpu.memory_space<vmem>>, %arg2: memref<37x32xbf16, #tpu.memory_space<vmem>>, %arg3: memref<4x2x128xbf16, #tpu.memory_space<vmem>>, %arg4: memref<33x96xbf16, #tpu.memory_space<vmem>>, %arg5: memref<97x12xbf16, #tpu.memory_space<vmem>>, %arg6: memref<2x128xf32, #tpu.memory_space<vmem>>) attributes {dimension_semantics = [#tpu.dimension_semantics<arbitrary>], iteration_bounds = array<i64: 1>, scalar_prefetch = 0 : i64, scratch_operands = 0 : i64, tpu.core_type = #tpu.core_type<tc>, window_params = [{pipeline_mode = #tpu.pipeline_mode<synchronous>, transform_indices = @transform_0, window_bounds = array<i64: 4, 128, 37>}, {pipeline_mode = #tpu.pipeline_mode<synchronous>, transform_indices = @transform_1, window_bounds = array<i64: 37, 32>}, {pipeline_mode = #tpu.pipeline_mode<synchronous>, transform_indices = @transform_2, window_bounds = array<i64: 4, 2, 128>}, {pipeline_mode = #tpu.pipeline_mode<synchronous>, transform_indices = @transform_3, window_bounds = array<i64: 33, 96>}, {pipeline_mode = #tpu.pipeline_mode<synchronous>, transform_indices = @transform_4, window_bounds = array<i64: 97, 12>}, {pipeline_mode = #tpu.pipeline_mode<synchronous>, transform_indices = @transform_5, window_bounds = array<i64: 2, 128>}]} {
    %cst = arith.constant 0.000000e+00 : f32
    %0 = vector.broadcast %cst : f32 to vector<2x32xf32>
    %c0_i32 = arith.constant 0 : i32
    %1 = arith.index_cast %c0_i32 : i32 to index
    %c0 = arith.constant 0 : index
    %c0_0 = arith.constant 0 : index
    %2 = vector.load %arg1[%1, %c0, %c0_0] : memref<4x128x37xbf16, #tpu.memory_space<vmem>>, vector<1x128x37xbf16>
    %3 = vector.shape_cast %2 : vector<1x128x37xbf16> to vector<128x37xbf16>
    %c0_1 = arith.constant 0 : index
    %c0_2 = arith.constant 0 : index
    %4 = vector.load %arg2[%c0_1, %c0_2] : memref<37x32xbf16, #tpu.memory_space<vmem>>, vector<37x32xbf16>
    %cst_3 = arith.constant dense<0.000000e+00> : vector<128x32xf32>
    %5 = tpu.matmul %3, %4, %cst_3 {dimension_numbers = #tpu.dot_dimension_numbers<[1], [0], [0], [1], [0, 0, 1, 1], [], []>} : vector<128x37xbf16>, vector<37x32xbf16>, vector<128x32xf32> -> vector<128x32xf32>
    %cst_4 = arith.constant 0.000000e+00 : f32
    %6 = vector.broadcast %cst_4 : f32 to vector<128x32xf32>
    %7 = arith.maximumf %5, %6 : vector<128x32xf32>
    %8 = arith.truncf %7 : vector<128x32xf32> to vector<128x32xbf16>
    %9 = arith.index_cast %c0_i32 : i32 to index
    %c0_5 = arith.constant 0 : index
    %c0_6 = arith.constant 0 : index
    %10 = vector.load %arg3[%9, %c0_5, %c0_6] : memref<4x2x128xbf16, #tpu.memory_space<vmem>>, vector<1x2x128xbf16>
    %11 = vector.shape_cast %10 : vector<1x2x128xbf16> to vector<2x128xbf16>
    %cst_7 = arith.constant dense<0.000000e+00> : vector<2x32xf32>
    %12 = tpu.matmul %11, %8, %cst_7 {dimension_numbers = #tpu.dot_dimension_numbers<[1], [0], [0], [1], [0, 0, 1, 1], [], []>} : vector<2x128xbf16>, vector<128x32xbf16>, vector<2x32xf32> -> vector<2x32xf32>
    %13 = arith.addf %0, %12 : vector<2x32xf32>
    %c1_i32 = arith.constant 1 : i32
    %14 = arith.index_cast %c1_i32 : i32 to index
    %c0_8 = arith.constant 0 : index
    %c0_9 = arith.constant 0 : index
    %15 = vector.load %arg1[%14, %c0_8, %c0_9] : memref<4x128x37xbf16, #tpu.memory_space<vmem>>, vector<1x128x37xbf16>
    %16 = vector.shape_cast %15 : vector<1x128x37xbf16> to vector<128x37xbf16>
    %c0_10 = arith.constant 0 : index
    %c0_11 = arith.constant 0 : index
    %17 = vector.load %arg2[%c0_10, %c0_11] : memref<37x32xbf16, #tpu.memory_space<vmem>>, vector<37x32xbf16>
    %cst_12 = arith.constant dense<0.000000e+00> : vector<128x32xf32>
    %18 = tpu.matmul %16, %17, %cst_12 {dimension_numbers = #tpu.dot_dimension_numbers<[1], [0], [0], [1], [0, 0, 1, 1], [], []>} : vector<128x37xbf16>, vector<37x32xbf16>, vector<128x32xf32> -> vector<128x32xf32>
    %cst_13 = arith.constant 0.000000e+00 : f32
    %19 = vector.broadcast %cst_13 : f32 to vector<128x32xf32>
    %20 = arith.maximumf %18, %19 : vector<128x32xf32>
    %21 = arith.truncf %20 : vector<128x32xf32> to vector<128x32xbf16>
    %22 = arith.index_cast %c1_i32 : i32 to index
    %c0_14 = arith.constant 0 : index
    %c0_15 = arith.constant 0 : index
    %23 = vector.load %arg3[%22, %c0_14, %c0_15] : memref<4x2x128xbf16, #tpu.memory_space<vmem>>, vector<1x2x128xbf16>
    %24 = vector.shape_cast %23 : vector<1x2x128xbf16> to vector<2x128xbf16>
    %cst_16 = arith.constant dense<0.000000e+00> : vector<2x32xf32>
    %25 = tpu.matmul %24, %21, %cst_16 {dimension_numbers = #tpu.dot_dimension_numbers<[1], [0], [0], [1], [0, 0, 1, 1], [], []>} : vector<2x128xbf16>, vector<128x32xbf16>, vector<2x32xf32> -> vector<2x32xf32>
    %26 = arith.addf %13, %25 : vector<2x32xf32>
    %c2_i32 = arith.constant 2 : i32
    %27 = arith.index_cast %c2_i32 : i32 to index
    %c0_17 = arith.constant 0 : index
    %c0_18 = arith.constant 0 : index
    %28 = vector.load %arg1[%27, %c0_17, %c0_18] : memref<4x128x37xbf16, #tpu.memory_space<vmem>>, vector<1x128x37xbf16>
    %29 = vector.shape_cast %28 : vector<1x128x37xbf16> to vector<128x37xbf16>
    %c0_19 = arith.constant 0 : index
    %c0_20 = arith.constant 0 : index
    %30 = vector.load %arg2[%c0_19, %c0_20] : memref<37x32xbf16, #tpu.memory_space<vmem>>, vector<37x32xbf16>
    %cst_21 = arith.constant dense<0.000000e+00> : vector<128x32xf32>
    %31 = tpu.matmul %29, %30, %cst_21 {dimension_numbers = #tpu.dot_dimension_numbers<[1], [0], [0], [1], [0, 0, 1, 1], [], []>} : vector<128x37xbf16>, vector<37x32xbf16>, vector<128x32xf32> -> vector<128x32xf32>
    %cst_22 = arith.constant 0.000000e+00 : f32
    %32 = vector.broadcast %cst_22 : f32 to vector<128x32xf32>
    %33 = arith.maximumf %31, %32 : vector<128x32xf32>
    %34 = arith.truncf %33 : vector<128x32xf32> to vector<128x32xbf16>
    %35 = arith.index_cast %c2_i32 : i32 to index
    %c0_23 = arith.constant 0 : index
    %c0_24 = arith.constant 0 : index
    %36 = vector.load %arg3[%35, %c0_23, %c0_24] : memref<4x2x128xbf16, #tpu.memory_space<vmem>>, vector<1x2x128xbf16>
    %37 = vector.shape_cast %36 : vector<1x2x128xbf16> to vector<2x128xbf16>
    %cst_25 = arith.constant dense<0.000000e+00> : vector<2x32xf32>
    %38 = tpu.matmul %37, %34, %cst_25 {dimension_numbers = #tpu.dot_dimension_numbers<[1], [0], [0], [1], [0, 0, 1, 1], [], []>} : vector<2x128xbf16>, vector<128x32xbf16>, vector<2x32xf32> -> vector<2x32xf32>
    %39 = arith.addf %26, %38 : vector<2x32xf32>
    %c3_i32 = arith.constant 3 : i32
    %40 = arith.index_cast %c3_i32 : i32 to index
    %c0_26 = arith.constant 0 : index
    %c0_27 = arith.constant 0 : index
    %41 = vector.load %arg1[%40, %c0_26, %c0_27] : memref<4x128x37xbf16, #tpu.memory_space<vmem>>, vector<1x128x37xbf16>
    %42 = vector.shape_cast %41 : vector<1x128x37xbf16> to vector<128x37xbf16>
    %c0_28 = arith.constant 0 : index
    %c0_29 = arith.constant 0 : index
    %43 = vector.load %arg2[%c0_28, %c0_29] : memref<37x32xbf16, #tpu.memory_space<vmem>>, vector<37x32xbf16>
    %cst_30 = arith.constant dense<0.000000e+00> : vector<128x32xf32>
    %44 = tpu.matmul %42, %43, %cst_30 {dimension_numbers = #tpu.dot_dimension_numbers<[1], [0], [0], [1], [0, 0, 1, 1], [], []>} : vector<128x37xbf16>, vector<37x32xbf16>, vector<128x32xf32> -> vector<128x32xf32>
    %cst_31 = arith.constant 0.000000e+00 : f32
    %45 = vector.broadcast %cst_31 : f32 to vector<128x32xf32>
    %46 = arith.maximumf %44, %45 : vector<128x32xf32>
    %47 = arith.truncf %46 : vector<128x32xf32> to vector<128x32xbf16>
    %48 = arith.index_cast %c3_i32 : i32 to index
    %c0_32 = arith.constant 0 : index
    %c0_33 = arith.constant 0 : index
    %49 = vector.load %arg3[%48, %c0_32, %c0_33] : memref<4x2x128xbf16, #tpu.memory_space<vmem>>, vector<1x2x128xbf16>
    %50 = vector.shape_cast %49 : vector<1x2x128xbf16> to vector<2x128xbf16>
    %cst_34 = arith.constant dense<0.000000e+00> : vector<2x32xf32>
    %51 = tpu.matmul %50, %47, %cst_34 {dimension_numbers = #tpu.dot_dimension_numbers<[1], [0], [0], [1], [0, 0, 1, 1], [], []>} : vector<2x128xbf16>, vector<128x32xbf16>, vector<2x32xf32> -> vector<2x32xf32>
    %52 = arith.addf %39, %51 : vector<2x32xf32>
    %c4_i32 = arith.constant 4 : i32
    %53 = arith.truncf %52 : vector<2x32xf32> to vector<2x32xbf16>
    %c0_35 = arith.constant 0 : index
    %c0_36 = arith.constant 0 : index
    %54 = vector.load %arg4[%c0_35, %c0_36] : memref<33x96xbf16, #tpu.memory_space<vmem>>, vector<32x96xbf16>
    %cst_37 = arith.constant dense<0.000000e+00> : vector<2x96xf32>
    %55 = tpu.matmul %53, %54, %cst_37 {dimension_numbers = #tpu.dot_dimension_numbers<[1], [0], [0], [1], [0, 0, 1, 1], [], []>} : vector<2x32xbf16>, vector<32x96xbf16>, vector<2x96xf32> -> vector<2x96xf32>
    %c32 = arith.constant 32 : index
    %c0_38 = arith.constant 0 : index
    %56 = vector.load %arg4[%c32, %c0_38] : memref<33x96xbf16, #tpu.memory_space<vmem>>, vector<1x96xbf16>
    %57 = arith.extf %56 : vector<1x96xbf16> to vector<1x96xf32>
    %58 = vector.broadcast %57 : vector<1x96xf32> to vector<2x96xf32>
    %59 = arith.addf %55, %58 : vector<2x96xf32>
    %cst_39 = arith.constant 0.000000e+00 : f32
    %60 = vector.broadcast %cst_39 : f32 to vector<2x96xf32>
    %61 = arith.maximumf %59, %60 : vector<2x96xf32>
    %62 = arith.truncf %61 : vector<2x96xf32> to vector<2x96xbf16>
    %c0_40 = arith.constant 0 : index
    %c0_41 = arith.constant 0 : index
    %63 = vector.load %arg5[%c0_40, %c0_41] : memref<97x12xbf16, #tpu.memory_space<vmem>>, vector<96x12xbf16>
    %cst_42 = arith.constant dense<0.000000e+00> : vector<2x12xf32>
    %64 = tpu.matmul %62, %63, %cst_42 {dimension_numbers = #tpu.dot_dimension_numbers<[1], [0], [0], [1], [0, 0, 1, 1], [], []>} : vector<2x96xbf16>, vector<96x12xbf16>, vector<2x12xf32> -> vector<2x12xf32>
    %c96 = arith.constant 96 : index
    %c0_43 = arith.constant 0 : index
    %65 = vector.load %arg5[%c96, %c0_43] : memref<97x12xbf16, #tpu.memory_space<vmem>>, vector<1x12xbf16>
    %66 = arith.extf %65 : vector<1x12xbf16> to vector<1x12xf32>
    %67 = vector.broadcast %66 : vector<1x12xf32> to vector<2x12xf32>
    %68 = arith.addf %64, %67 : vector<2x12xf32>
    %cst_44 = arith.constant 0.000000e+00 : f32
    %69 = vector.broadcast %cst_44 : f32 to vector<2x52xf32>
    %cst_45 = arith.constant 0.000000e+00 : f32
    %70 = vector.broadcast %cst_45 : f32 to vector<2x32xf32>
    %71 = tpu.concatenate %68, %69, %52, %70 in 1 : vector<2x12xf32>, vector<2x52xf32>, vector<2x32xf32>, vector<2x32xf32> -> vector<2x128xf32>
    %c0_46 = arith.constant 0 : index
    %c0_47 = arith.constant 0 : index
    %72 = vector.load %arg6[%c0_46, %c0_47] : memref<2x128xf32, #tpu.memory_space<vmem>>, vector<2x128xf32>
    tpu.vector_store %arg6[%c0_46, %c0_47], %71 {strides = array<i32>} : memref<2x128xf32, #tpu.memory_space<vmem>>, vector<2x128xf32>,
    return
  }
  func.func @transform_0(%arg0: i32) -> (i32, i32, i32) {
    %c0_i32 = arith.constant 0 : i32
    %c0_i32_0 = arith.constant 0 : i32
    %c0_i32_1 = arith.constant 0 : i32
    %c0_i32_2 = arith.constant 0 : i32
    return %c0_i32, %c0_i32_0, %c0_i32_1 : i32, i32, i32
  }
  func.func @transform_1(%arg0: i32) -> (i32, i32) {
    %c0_i32 = arith.constant 0 : i32
    %c0_i32_0 = arith.constant 0 : i32
    %c0_i32_1 = arith.constant 0 : i32
    return %c0_i32, %c0_i32_0 : i32, i32
  }
  func.func @transform_2(%arg0: i32) -> (i32, i32, i32) {
    %c0_i32 = arith.constant 0 : i32
    %c0_i32_0 = arith.constant 0 : i32
    %c0_i32_1 = arith.constant 0 : i32
    %c0_i32_2 = arith.constant 0 : i32
    return %c0_i32, %c0_i32_0, %c0_i32_1 : i32, i32, i32
  }
  func.func @transform_3(%arg0: i32) -> (i32, i32) {
    %c0_i32 = arith.constant 0 : i32
    %c0_i32_0 = arith.constant 0 : i32
    %c0_i32_1 = arith.constant 0 : i32
    return %c0_i32, %c0_i32_0 : i32, i32
  }
  func.func @transform_4(%arg0: i32) -> (i32, i32) {
    %c0_i32 = arith.constant 0 : i32
    %c0_i32_0 = arith.constant 0 : i32
    %c0_i32_1 = arith.constant 0 : i32
    return %c0_i32, %c0_i32_0 : i32, i32
  }
  func.func @transform_5(%arg0: i32) -> (i32, i32) {
    %c0_i32 = arith.constant 0 : i32
    %c0_i32_0 = arith.constant 0 : i32
    %c0_i32_1 = arith.constant 0 : i32
    return %c0_i32, %c0_i32_0 : i32, i32
  }
}

</mosaic_0001>

<bundles_post_ra>
// kernel: ensemble_forward.1
= control target key start
LH: loop header
LB: loop body
LE: loop exit
PB: predicated region body
PF: predicated region fallthrough
CT: control target
= control target key end

     0   :  { %vm123_vm0 = vcmask 1041408   ;;  %vm124_vm1 = vcmask 1042432   ;;  %v1711_v3 = vmov 65535   ;;  %vm98_vm2 = vcmask 302080   ;;  %s2041_s0 = inlined_call_operand.vmem [shape: bf16[4,128,37], index: 0, kind: input, shape index: {}]   ;;  %s2042_s1 = inlined_call_operand.vmem [shape: bf16[37,32], index: 1, kind: input, shape index: {}]   ;;  %s2043_s2 = inlined_call_operand.vmem [shape: bf16[4,2,128], index: 2, kind: input, shape index: {}]   ;;  %s2044_s3 = inlined_call_operand.vmem [shape: bf16[33,96], index: 3, kind: input, shape index: {}]   ;;  %s2045_s4 = inlined_call_operand.vmem [shape: bf16[97,12], index: 4, kind: input, shape index: {}]   ;;  %s2046_s5 = inlined_call_operand.hbm [shape: f32[2,128], index: 5, kind: output, shape index: {}]  }
   0x1   :  { %v1749_v0 = vld [vmem:[%s2042_s1] sm:$0xff]   ;;  %v1754_v1 = vld [vmem:[%s2042_s1 + $0x8] sm:$0xff]   ;;  %v1646_v2 = vld [vmem:[%s2042_s1 + $0x10] ss:$0 sps:$4 sm:$0x77]   ;;  %v125_v4 = vsel %vm123_vm0, 4294967295, %v1711_v3 }
   0x2   :  { %1457 = vmatprep.subr.bf16.mxu1 %v1749_v0  ;;  %1435 = vmatprep.subr.bf16.mxu0 %v1749_v0  ;;  %v126_v5 = vsel %vm124_vm1, %v125_v4, 0  ;;  %v1647_v6 = vld [vmem:[%s2041_s0 + $0x40] sm:$0xff]   ;;  %v1648_v8 = vld [vmem:[%s2041_s0 + $0x48] sm:$0xff]   ;;  %v1649_v9 = vld [vmem:[%s2041_s0 + $0x50] sm:$0xff]  }
   0x3   :  { %1458 = vmatpush3.bf16.msra.mxu1 %v1749_v0  ;;  %1436 = vmatpush3.bf16.msra.mxu0 %v1749_v0  ;;  %v128_v7 = vand.u32 %v1646_v2, %v126_v5  ;;  %v1655_v10 = vld [vmem:[%s2041_s0] sm:$0xff]   ;;  %v1656_v11 = vld [vmem:[%s2041_s0 + $0x8] sm:$0xff]   ;;  %v1657_v12 = vld [vmem:[%s2041_s0 + $0x10] sm:$0xff]  }
   0x4   :  { %1459 = vmatprep.subr.bf16.mxu1 %v1754_v1  ;;  %1437 = vmatprep.subr.bf16.mxu0 %v1754_v1  ;;  %v1650_v13 = vld [vmem:[%s2041_s0 + $0x58] sm:$0xff]   ;;  %v1651_v14 = vld [vmem:[%s2041_s0 + $0x60] sm:$0xff]   ;;  %v1652_v17 = vld [vmem:[%s2041_s0 + $0x68] sm:$0xff]  }
   0x5   :  { %1463 = vmatprep.mubr.msk.bf16.mxu1 %vm98_vm2, %v1647_v6  ;;  %1441 = vmatprep.mubr.msk.bf16.mxu0 %vm98_vm2, %v1655_v10  ;;  %v1658_v15 = vld [vmem:[%s2041_s0 + $0x18] sm:$0xff]   ;;  %v1659_v16 = vld [vmem:[%s2041_s0 + $0x20] sm:$0xff]   ;;  %v1653_v18 = vld [vmem:[%s2041_s0 + $0x70] sm:$0xff]  }
   0x6   :  { %v1660_v19 = vld [vmem:[%s2041_s0 + $0x28] sm:$0xff]   ;;  %v1661_v20 = vld [vmem:[%s2041_s0 + $0x30] sm:$0xff]   ;;  %v1654_v21 = vld [vmem:[%s2041_s0 + $0x78] sm:$0xff]  }
   0x7   :  { %1460 = vmatpush3.bf16.msra.mxu1 %v1754_v1  ;;  %1438 = vmatpush3.bf16.msra.mxu0 %v1754_v1  ;;  %v1662_v22 = vld [vmem:[%s2041_s0 + $0x38] sm:$0xff]   ;;  %v1663_v23 = vld [vmem:[%s2041_s0 + $0x80] sm:$0xff]  }
   0x8   :  { %1461 = vmatprep.subr.bf16.mxu1 %v128_v7  ;;  %1439 = vmatprep.subr.bf16.mxu0 %v128_v7 }
   0xb   :  { %1462 = vmatpush3.bf16.msra.mxu1 %v128_v7  ;;  %1440 = vmatpush3.bf16.msra.mxu0 %v128_v7 }
   0xc   :  { %1519 = vmatprep.subr.bf16.mxu1 %v1749_v0 }
   0xe   :  { %1464 = vmatmul.mubr.msk.bf16.vlgmr.msra.gmra.mrb[0].mxu1 %vm98_vm2, %v1648_v8  ;;  %1442 = vmatmul.mubr.msk.bf16.vlgmr.msra.gmra.mrb[0].mxu0 %vm98_vm2, %v1656_v11 }
   0xf   :  { %1467 = vmatprep.mubr.msk.bf16.mxu1 %vm98_vm2, %v1649_v9  ;;  %1520 = vmatpush3.bf16.msra.mxu1 %v1749_v0 }
  0x10   :  { %1445 = vmatprep.mubr.msk.bf16.mxu0 %vm98_vm2, %v1657_v12  ;;  %1521 = vmatprep.subr.bf16.mxu1 %v1754_v1 }
  0x13   :  { %1522 = vmatpush3.bf16.msra.mxu1 %v1754_v1 }
  0x14   :  { %1523 = vmatprep.subr.bf16.mxu1 %v128_v7 }
  0x16   :  { %1468 = vmatmul.mubr.msk.bf16.gmra.mrb[4].mxu1 %vm98_vm2, %v1650_v13  ;;  %1446 = vmatmul.mubr.msk.bf16.gmra.mrb[4].mxu0 %vm98_vm2, %v1658_v15 }
  0x17   :  { %1471 = vmatprep.mubr.msk.bf16.mxu1 %vm98_vm2, %v1651_v14  ;;  %1449 = vmatprep.mubr.msk.bf16.mxu0 %vm98_vm2, %v1659_v16 }
  0x18   :  { %1524 = vmatpush3.bf16.msra.mxu1 %v128_v7 }
  0x19   :  { %1561 = vmatprep.subr.bf16.mxu1 %v1749_v0 }
  0x1e   :  { %1472 = vmatmul.mubr.msk.bf16.gmra.mrb[8].mxu1 %vm98_vm2, %v1652_v17  ;;  %1450 = vmatmul.mubr.msk.bf16.gmra.mrb[8].mxu0 %vm98_vm2, %v1660_v19 }
  0x1f   :  { %1475 = vmatprep.mubr.msk.bf16.mxu1 %vm98_vm2, %v1653_v18  ;;  %1453 = vmatprep.mubr.msk.bf16.mxu0 %vm98_vm2, %v1661_v20 }
  0x26   :  { %1476 = vmatmul.mubr.msk.bf16.gmra.mrb[12].mxu1 %vm98_vm2, %v1654_v21  ;;  %1454 = vmatmul.mubr.msk.bf16.gmra.mrb[12].mxu0 %vm98_vm2, %v1662_v22 }
  0x27   :  { %1525 = vmatprep.mubr.msk.bf16.mxu1 %vm98_vm2, %v1663_v23 }
  0x28   :  { %10 = vsyncpa [#allocation3], 0  ;;  %v1664_v24 = vld [vmem:[%s2041_s0 + $0x88] sm:$0xff]   ;;  %v1665_v25 = vld [vmem:[%s2041_s0 + $0x90] sm:$0xff]   ;;  %v1712_v39 = vmov 0.0   ;;  %vm1713_vm3 = vmmov 0  }
  0x29   :  { %v1666_v26 = vld [vmem:[%s2041_s0 + $0x98] sm:$0xff]   ;;  %v1667_v27 = vld [vmem:[%s2041_s0 + $0xa0] sm:$0xff]   ;;  %v1668_v28 = vld [vmem:[%s2041_s0 + $0xa8] sm:$0xff]   ;;  %1479 = vmatprep.subr.bf16.mxu0 %v1712_v39  ;;  %1495 = vmatprep.mubr.msk.bf16.mxu0 %vm1713_vm3, %v1712_v39  ;;  %vm1049_vm4 = vcmask 261120   ;;  %s1714_s23 = smov 64   ;;  %vm1149_vm5 = vcmask 785408  }
  0x2a   :  { %v1669_v29 = vld [vmem:[%s2041_s0 + $0xb0] sm:$0xff]   ;;  %v1670_v30 = vld [vmem:[%s2041_s0 + $0xb8] sm:$0xff]   ;;  %v1671_v31 = vld [vmem:[%s2041_s0 + $0xc0] sm:$0xff]   ;;  %vm1197_vm6 = vcmask 97280   ;;  %vm1199_vm7 = vcmask 523264  }
  0x2b   :  { %v1672_v32 = vld [vmem:[%s2041_s0 + $0xc8] sm:$0xff]   ;;  %v1673_v33 = vld [vmem:[%s2041_s0 + $0xd0] sm:$0xff]   ;;  %v1674_v34 = vld [vmem:[%s2041_s0 + $0xd8] sm:$0xff]  }
  0x2c   :  { %v1675_v35 = vld [vmem:[%s2041_s0 + $0xe0] sm:$0xff]   ;;  %v1676_v36 = vld [vmem:[%s2041_s0 + $0xe8] sm:$0xff]   ;;  %v1677_v37 = vld [vmem:[%s2041_s0 + $0xf0] sm:$0xff]  }
  0x2d   :  { %v1678_v38 = vld [vmem:[%s2041_s0 + $0xf8] sm:$0xff]   ;;  %v1679_v60 = vld [vmem:[%s2044_s3] sm:$0xff]  }
  0x2e   :  { %1526 = vmatmul.mubr.msk.bf16.vlgmr.msra.gmra.mrb[16].mxu1 %vm98_vm2, %v1664_v24 }
  0x2f   :  { %1562 = vmatpush3.bf16.msra.mxu1 %v1749_v0  ;;  %1529 = vmatprep.mubr.msk.bf16.mxu1 %vm98_vm2, %v1665_v25  ;;  %v1680_v0 = vld [vmem:[%s2044_s3 + $0x8] sm:$0xff]  }
  0x30   :  { %1563 = vmatprep.subr.bf16.mxu1 %v1754_v1 }
  0x33   :  { %1564 = vmatpush3.bf16.msra.mxu1 %v1754_v1 }
  0x34   :  { %1565 = vmatprep.subr.bf16.mxu1 %v128_v7 }
  0x36   :  { %1530 = vmatmul.mubr.msk.bf16.gmra.mrb[20].mxu1 %vm98_vm2, %v1666_v26 }
  0x37   :  { %1533 = vmatprep.mubr.msk.bf16.mxu1 %vm98_vm2, %v1667_v27  ;;  %1566 = vmatpush3.bf16.msra.mxu1 %v128_v7 }
  0x38   :  { %1603 = vmatprep.subr.bf16.mxu1 %v1712_v39 }
  0x3e   :  { %1534 = vmatmul.mubr.msk.bf16.gmra.mrb[24].mxu1 %vm98_vm2, %v1668_v28 }
  0x3f   :  { %1537 = vmatprep.mubr.msk.bf16.mxu1 %vm98_vm2, %v1669_v29 }
  0x46   :  { %1538 = vmatmul.mubr.msk.bf16.gmra.mrb[28].mxu1 %vm98_vm2, %v1670_v30 }
  0x47   :  { %1567 = vmatprep.mubr.msk.bf16.mxu1 %vm98_vm2, %v1671_v31 }
  0x4e   :  { %1568 = vmatmul.mubr.msk.bf16.vlgmr.msra.gmra.mrb[32].mxu1 %vm98_vm2, %v1672_v32 }
  0x4f   :  { %1571 = vmatprep.mubr.msk.bf16.mxu1 %vm98_vm2, %v1673_v33  ;;  %1604 = vmatpush3.bf16.msra.mxu1 %v1679_v60 }
  0x50   :  { %1605 = vmatprep.subr.bf16.mxu1 %v1712_v39 }
  0x53   :  { %1606 = vmatpush3.bf16.msra.mxu1 %v1680_v0 }
  0x54   :  { %1611 = vmatprep.subr.bf16.mxu1 %v1712_v39 }
  0x56   :  { %1572 = vmatmul.mubr.msk.bf16.gmra.mrb[36].mxu1 %vm98_vm2, %v1674_v34 }
  0x57   :  { %1575 = vmatprep.mubr.msk.bf16.mxu1 %vm98_vm2, %v1675_v35 }
  0x5e   :  { %1576 = vmatmul.mubr.msk.bf16.gmra.mrb[40].mxu1 %vm98_vm2, %v1676_v36 }
  0x5f   :  { %1579 = vmatprep.mubr.msk.bf16.mxu1 %vm98_vm2, %v1677_v37 }
  0x66   :  { %1580 = vmatmul.mubr.msk.bf16.gmra.mrb[44].mxu1 %vm98_vm2, %v1678_v38 }
  0x67   :  { %1607 = vmatprep.mubr.msk.bf16.mxu1 %vm1713_vm3, %v1712_v39 }
  0xe1   :  { %v1465_v40 = vpop.f32.mrb[0].mxu1  ;;  %v1443_v42 = vpop.f32.mrb[0].mxu0 }
  0xe2   :  { %v367_v41 = vpop.f32.mrb[1].mxu1  ;;  %v229_v44 = vmax.f32 %v1443_v42, 0.0  ;;  %v164_v45 = vpop.f32.mrb[1].mxu0  ;;  %v432_v46 = vmax.f32 %v1465_v40, 0.0 }
  0xe3   :  { %v1466_v43 = vpop.f32.mrb[2].mxu1  ;;  %v227_v49 = vmax.f32 %v164_v45, 0.0  ;;  %v1444_v50 = vpop.f32.mrb[2].mxu0  ;;  %v430_v51 = vmax.f32 %v367_v41, 0.0 }
  0xe4   :  { %v433_v47 = vmax.f32 %v1466_v43, 0.0  ;;  %v370_v48 = vpop.f32.mrb[3].mxu1  ;;  %v230_v53 = vmax.f32 %v1444_v50, 0.0  ;;  %v167_v54 = vpop.f32.mrb[3].mxu0 }
  0xe5   :  { %v431_v52 = vmax.f32 %v370_v48, 0.0  ;;  %v228_v56 = vmax.f32 %v167_v54, 0.0 }
  0xe6   :  { %v447_v55 = vpack.c.bf16 %v433_v47, %v432_v46  ;;  %v1909_v58 = vpack.c.bf16 %v230_v53, %v229_v44 }
  0xe7   :  { %v446_v57 = vpack.c.bf16 %v431_v52, %v430_v51  ;;  %v1911_v59 = vpack.c.bf16 %v228_v56, %v227_v49 }
  0xe9   :  { %v1469_v61 = vpop.f32.mrb[4].mxu1  ;;  %1480 = vmatpush3.bf16.msra.mxu0 %v446_v57  ;;  %v1447_v63 = vpop.f32.mrb[4].mxu0 }
  0xea   :  { %v383_v62 = vpop.f32.mrb[5].mxu1  ;;  %1481 = vmatprep.subr.bf16.mxu0 %v1712_v39  ;;  %v233_v2 = vmax.f32 %v1447_v63, 0.0  ;;  %v180_v3 = vpop.f32.mrb[5].mxu0  ;;  %v436_v4 = vmax.f32 %v1469_v61, 0.0 }
  0xeb   :  { %v1470_v1 = vpop.f32.mrb[6].mxu1  ;;  %v231_v7 = vmax.f32 %v180_v3, 0.0  ;;  %v1448_v8 = vpop.f32.mrb[6].mxu0  ;;  %v434_v9 = vmax.f32 %v383_v62, 0.0 }
  0xec   :  { %v437_v5 = vmax.f32 %v1470_v1, 0.0  ;;  %v386_v6 = vpop.f32.mrb[7].mxu1  ;;  %v234_v11 = vmax.f32 %v1448_v8, 0.0  ;;  %v183_v12 = vpop.f32.mrb[7].mxu0 }
  0xed   :  { %v435_v10 = vmax.f32 %v386_v6, 0.0  ;;  %1482 = vmatpush3.bf16.msra.mxu0 %v447_v55  ;;  %v232_v14 = vmax.f32 %v183_v12, 0.0 }
  0xee   :  { %v449_v13 = vpack.c.bf16 %v437_v5, %v436_v4  ;;  %1483 = vmatprep.subr.bf16.mxu0 %v1712_v39  ;;  %v1922_v16 = vpack.c.bf16 %v234_v11, %v233_v2  ;;  %v1268_v4 = vld [vmem:[%s2043_s2 + $0x1] sm:$0x1] }
  0xef   :  { %v448_v15 = vpack.c.bf16 %v435_v10, %v434_v9  ;;  %v1925_v17 = vpack.c.bf16 %v232_v14, %v231_v7 }
  0xf1   :  { %v1473_v18 = vpop.f32.mrb[8].mxu1  ;;  %1484 = vmatpush3.bf16.msra.mxu0 %v448_v15  ;;  %v1451_v20 = vpop.f32.mrb[8].mxu0 }
  0xf2   :  { %v399_v19 = vpop.f32.mrb[9].mxu1  ;;  %1485 = vmatprep.subr.bf16.mxu0 %v1712_v39  ;;  %v237_v22 = vmax.f32 %v1451_v20, 0.0  ;;  %v196_v23 = vpop.f32.mrb[9].mxu0  ;;  %v440_v24 = vmax.f32 %v1473_v18, 0.0 }
  0xf3   :  { %v1474_v21 = vpop.f32.mrb[10].mxu1  ;;  %v235_v27 = vmax.f32 %v196_v23, 0.0  ;;  %v1452_v28 = vpop.f32.mrb[10].mxu0  ;;  %v438_v29 = vmax.f32 %v399_v19, 0.0 }
  0xf4   :  { %v441_v25 = vmax.f32 %v1474_v21, 0.0  ;;  %v402_v26 = vpop.f32.mrb[11].mxu1  ;;  %v238_v31 = vmax.f32 %v1452_v28, 0.0  ;;  %v199_v32 = vpop.f32.mrb[11].mxu0 }
  0xf5   :  { %v439_v30 = vmax.f32 %v402_v26, 0.0  ;;  %1486 = vmatpush3.bf16.msra.mxu0 %v449_v13  ;;  %v236_v34 = vmax.f32 %v199_v32, 0.0 }
  0xf6   :  { %v451_v33 = vpack.c.bf16 %v441_v25, %v440_v24  ;;  %1487 = vmatprep.subr.bf16.mxu0 %v1712_v39  ;;  %v1929_v36 = vpack.c.bf16 %v238_v31, %v237_v22 }
  0xf7   :  { %v450_v35 = vpack.c.bf16 %v439_v30, %v438_v29  ;;  %v1931_v37 = vpack.c.bf16 %v236_v34, %v235_v27 }
  0xf9   :  { %v1477_v38 = vpop.f32.mrb[12].mxu1  ;;  %1488 = vmatpush3.bf16.msra.mxu0 %v450_v35  ;;  %v1455_v41 = vpop.f32.mrb[12].mxu0 }
  0xfa   :  { %v415_v40 = vpop.f32.mrb[13].mxu1  ;;  %1489 = vmatprep.subr.bf16.mxu0 %v1712_v39  ;;  %v241_v43 = vmax.f32 %v1455_v41, 0.0  ;;  %v212_v44 = vpop.f32.mrb[13].mxu0  ;;  %v444_v45 = vmax.f32 %v1477_v38, 0.0 }
  0xfb   :  { %v1478_v42 = vpop.f32.mrb[14].mxu1  ;;  %v239_v48 = vmax.f32 %v212_v44, 0.0  ;;  %v1456_v49 = vpop.f32.mrb[14].mxu0  ;;  %v442_v50 = vmax.f32 %v415_v40, 0.0 }
  0xfc   :  { %v445_v46 = vmax.f32 %v1478_v42, 0.0  ;;  %v418_v47 = vpop.f32.mrb[15].mxu1  ;;  %v242_v52 = vmax.f32 %v1456_v49, 0.0  ;;  %v215_v53 = vpop.f32.mrb[15].mxu0 }
  0xfd   :  { %v443_v51 = vmax.f32 %v418_v47, 0.0  ;;  %1490 = vmatpush3.bf16.msra.mxu0 %v451_v33  ;;  %v240_v55 = vmax.f32 %v215_v53, 0.0 }
  0xfe   :  { %v453_v54 = vpack.c.bf16 %v445_v46, %v444_v45  ;;  %1491 = vmatprep.subr.bf16.mxu0 %v1712_v39  ;;  %v1935_v57 = vpack.c.bf16 %v242_v52, %v241_v43 }
  0xff   :  { %v452_v56 = vpack.c.bf16 %v443_v51, %v442_v50  ;;  %v249_v60 = vpack.c.bf16 %v240_v55, %v239_v48 }
 0x101   :  { %1492 = vmatpush3.bf16.msra.mxu0 %v452_v56  ;;  %v1527_v61 = vpop.f32.mrb[16].mxu1 }
 0x102   :  { %1493 = vmatprep.subr.bf16.mxu0 %v1712_v39  ;;  %v716_v62 = vmax.f32 %v1527_v61, 0.0  ;;  %v651_v63 = vpop.f32.mrb[17].mxu1 }
 0x103   :  { %v714_v0 = vmax.f32 %v651_v63, 0.0  ;;  %v1528_v1 = vpop.f32.mrb[18].mxu1 }
 0x104   :  { %v717_v2 = vmax.f32 %v1528_v1, 0.0  ;;  %v654_v3 = vpop.f32.mrb[19].mxu1 }
 0x105   :  { %1494 = vmatpush3.bf16.msra.mxu0 %v453_v54  ;;  %v715_v5 = vmax.f32 %v654_v3, 0.0 }
 0x106   :  { %1499 = vmatprep.subr.bf16.mxu0 %v1712_v39  ;;  %v1942_v6 = vpack.c.bf16 %v717_v2, %v716_v62 }
 0x107   :  { %v730_v7 = vpack.c.bf16 %v715_v5, %v714_v0 }
 0x108   :  { %1496 = vmatmul.mubr.bf16.vlgmr.msra.gmra.mrb[16].mxu0 %v1268_v4 }
 0x109   :  { %1500 = vmatpush3.bf16.msra.mxu0 %v1911_v59  ;;  %v1531_v8 = vpop.f32.mrb[20].mxu1  ;;  %1515 = vmatprep.mubr.msk.bf16.mxu0 %vm1713_vm3, %v1712_v39 }
 0x10a   :  { %1501 = vmatprep.subr.bf16.mxu0 %v1712_v39  ;;  %v720_v9 = vmax.f32 %v1531_v8, 0.0  ;;  %v667_v10 = vpop.f32.mrb[21].mxu1 }
 0x10b   :  { %v718_v11 = vmax.f32 %v667_v10, 0.0  ;;  %v1532_v12 = vpop.f32.mrb[22].mxu1 }
 0x10c   :  { %v721_v13 = vmax.f32 %v1532_v12, 0.0  ;;  %v670_v14 = vpop.f32.mrb[23].mxu1 }
 0x10d   :  { %1502 = vmatpush3.bf16.msra.mxu0 %v1909_v58  ;;  %v719_v15 = vmax.f32 %v670_v14, 0.0 }
 0x10e   :  { %1503 = vmatprep.subr.bf16.mxu0 %v1712_v39  ;;  %v1950_v18 = vpack.c.bf16 %v721_v13, %v720_v9 }
 0x10f   :  { %v732_v59 = vpack.c.bf16 %v719_v15, %v718_v11 }
 0x111   :  { %1504 = vmatpush3.bf16.msra.mxu0 %v1925_v17  ;;  %v1535_v19 = vpop.f32.mrb[24].mxu1 }
 0x112   :  { %1505 = vmatprep.subr.bf16.mxu0 %v1712_v39  ;;  %v724_v20 = vmax.f32 %v1535_v19, 0.0  ;;  %v683_v21 = vpop.f32.mrb[25].mxu1 }
 0x113   :  { %v722_v22 = vmax.f32 %v683_v21, 0.0  ;;  %v1536_v23 = vpop.f32.mrb[26].mxu1 }
 0x114   :  { %v725_v24 = vmax.f32 %v1536_v23, 0.0  ;;  %v686_v25 = vpop.f32.mrb[27].mxu1 }
 0x115   :  { %1506 = vmatpush3.bf16.msra.mxu0 %v1922_v16  ;;  %v723_v58 = vmax.f32 %v686_v25, 0.0  ;;  %v1682_v25 = vld [vmem:[%s2045_s4 + $0x8] sm:$0xff]  }
 0x116   :  { %1507 = vmatprep.subr.bf16.mxu0 %v1712_v39  ;;  %v1956_v26 = vpack.c.bf16 %v725_v24, %v724_v20  ;;  %v1681_v20 = vld [vmem:[%s2045_s4] sm:$0xff]  }
 0x117   :  { %v734_v27 = vpack.c.bf16 %v723_v58, %v722_v22  ;;  %v1683_v58 = vld [vmem:[%s2045_s4 + $0x10] sm:$0xff]  }
 0x119   :  { %1508 = vmatpush3.bf16.msra.mxu0 %v1931_v37  ;;  %v1539_v17 = vpop.f32.mrb[28].mxu1 }
 0x11a   :  { %1509 = vmatprep.subr.bf16.mxu0 %v1712_v39  ;;  %v728_v28 = vmax.f32 %v1539_v17, 0.0  ;;  %v699_v29 = vpop.f32.mrb[29].mxu1  ;;  %v1686_v17 = vld [vmem:[%s2045_s4 + $0x28] sm:$0xff]  }
 0x11b   :  { %v726_v30 = vmax.f32 %v699_v29, 0.0  ;;  %v1540_v31 = vpop.f32.mrb[30].mxu1 }
 0x11c   :  { %v729_v32 = vmax.f32 %v1540_v31, 0.0  ;;  %v702_v33 = vpop.f32.mrb[31].mxu1 }
 0x11d   :  { %1510 = vmatpush3.bf16.msra.mxu0 %v1929_v36  ;;  %v727_v16 = vmax.f32 %v702_v33, 0.0  ;;  %v251_v36 = vld [vmem:[%s2043_s2] sm:$0x1] }
 0x11e   :  { %1511 = vmatprep.subr.bf16.mxu0 %v1712_v39  ;;  %v737_v34 = vpack.c.bf16 %v729_v32, %v728_v28  ;;  %v1033_v28 = vlaneseq }
 0x11f   :  { %v736_v35 = vpack.c.bf16 %v727_v16, %v726_v30  ;;  %v1031_v30 = vld [vmem:[%s2044_s3 + $0x10] sm:$0x1]  ;;  %s1715_s3 = smov [#allocation2]  }
 0x120   :  { %v1034_v29 = vshrl.u32 %v1033_v28, 7  ;;  %v1032_v31 = vunpack.c.l.bf16 %v1031_v30  ;;  %s1209_s10 = sshll.u32 %s1715_s3, 4  ;;  %s1210_s10 = int_to_ptr.vmem [resolvable:$true] %s1209_s10 }
 0x121   :  { %1512 = vmatpush3.bf16.msra.mxu0 %v249_v60  ;;  %v1569_v38 = vpop.f32.mrb[32].mxu1  ;;  %s1687_s11 = scalar_lea.vmem %s1210_s10, 32  ;;  %p1692_p1 = scmp.lt.s32.totalorder %s1210_s10, %s1210_s10 }
 0x122   :  { %1513 = vmatprep.subr.bf16.mxu0 %v1712_v39  ;;  %v961_v37 = vmax.f32 %v1569_v38, 0.0  ;;  %v896_v40 = vpop.f32.mrb[33].mxu1  ;;  %v1035_v32 = vsub.s32 0, %v1034_v29  ;;  %p1688_p0 = scmp.ne.s32.totalorder %s1210_s10, %s1687_s11  ;;  %p1693_p2 = scmp.lt.s32.totalorder %s1687_s11, %s1687_s11 }
 0x123   :  { %v959_v41 = vmax.f32 %v896_v40, 0.0  ;;  %v1570_v42 = vpop.f32.mrb[34].mxu1 }
 0x124   :  { %v962_v43 = vmax.f32 %v1570_v42, 0.0  ;;  %v899_v44 = vpop.f32.mrb[35].mxu1  ;;  %v1036_v33 = vrot.slane %v1032_v31, %v1035_v32  ;;  %p1694_p3 = por %p1693_p2, %p1692_p1 }
 0x125   :  { %1514 = vmatpush3.bf16.msra.mxu0 %v1935_v57  ;;  %v960_v45 = vmax.f32 %v899_v44, 0.0 }
 0x126   :  { %1541 = vmatprep.subr.bf16.mxu0 %v1712_v39  ;;  %v976_v46 = vpack.c.bf16 %v962_v43, %v961_v37  ;;  %p1695_p4 = pnand %p1694_p3, %p1688_p0 }
 0x127   :  { %v975_v47 = vpack.c.bf16 %v960_v45, %v959_v41  ;;  %v1107_v41 = vld [vmem:[%s2045_s4 + $0x30] sm:$0x1] }
 0x128   :  { %1516 = vmatmul.mubr.bf16.vlgmr.msra.gmra.mrb[16].mxu0 %v251_v36  ;;  %v1108_v42 = vunpack.c.l.bf16 %v1107_v41 }
 0x129   :  { %1542 = vmatpush3.bf16.msra.mxu0 %v730_v7  ;;  %v1573_v48 = vpop.f32.mrb[36].mxu1  ;;  %1557 = vmatprep.mubr.msk.bf16.mxu0 %vm1713_vm3, %v1712_v39 }
 0x12a   :  { %1543 = vmatprep.subr.bf16.mxu0 %v1712_v39  ;;  %v965_v49 = vmax.f32 %v1573_v48, 0.0  ;;  %v912_v50 = vpop.f32.mrb[37].mxu1  ;;  %v1112_v43 = vrot.slane %v1108_v42, %v1035_v32 }
 0x12b   :  { %v963_v51 = vmax.f32 %v912_v50, 0.0  ;;  %v1574_v52 = vpop.f32.mrb[38].mxu1 }
 0x12c   :  { %v966_v53 = vmax.f32 %v1574_v52, 0.0  ;;  %v915_v54 = vpop.f32.mrb[39].mxu1 }
 0x12d   :  { %1544 = vmatpush3.bf16.msra.mxu0 %v1942_v6  ;;  %v964_v55 = vmax.f32 %v915_v54, 0.0 }
 0x12e   :  { %1545 = vmatprep.subr.bf16.mxu0 %v1712_v39  ;;  %v978_v56 = vpack.c.bf16 %v966_v53, %v965_v49 }
 0x12f   :  { %v977_v57 = vpack.c.bf16 %v964_v55, %v963_v51 }
 0x131   :  { %1546 = vmatpush3.bf16.msra.mxu0 %v732_v59  ;;  %v1577_v60 = vpop.f32.mrb[40].mxu1  ;;  %v1334_v59 = vld [vmem:[%s2043_s2 + $0x3] sm:$0x1] }
 0x132   :  { %1547 = vmatprep.subr.bf16.mxu0 %v1712_v39  ;;  %v969_v61 = vmax.f32 %v1577_v60, 0.0  ;;  %v928_v62 = vpop.f32.mrb[41].mxu1 }
 0x133   :  { %v967_v63 = vmax.f32 %v928_v62, 0.0  ;;  %v1578_v0 = vpop.f32.mrb[42].mxu1 }
 0x134   :  { %v970_v1 = vmax.f32 %v1578_v0, 0.0  ;;  %v931_v2 = vpop.f32.mrb[43].mxu1 }
 0x135   :  { %1548 = vmatpush3.bf16.msra.mxu0 %v1950_v18  ;;  %v968_v3 = vmax.f32 %v931_v2, 0.0  ;;  %v1301_v18 = vld [vmem:[%s2043_s2 + $0x2] sm:$0x1] }
 0x136   :  { %1549 = vmatprep.subr.bf16.mxu0 %v1712_v39  ;;  %v980_v4 = vpack.c.bf16 %v970_v1, %v969_v61 }
 0x137   :  { %v979_v5 = vpack.c.bf16 %v968_v3, %v967_v63 }
 0x139   :  { %1550 = vmatpush3.bf16.msra.mxu0 %v734_v27  ;;  %v1581_v6 = vpop.f32.mrb[44].mxu1  ;;  %v1685_v27 = vld [vmem:[%s2045_s4 + $0x20] sm:$0xff]  }
 0x13a   :  { %1551 = vmatprep.subr.bf16.mxu0 %v1712_v39  ;;  %v973_v7 = vmax.f32 %v1581_v6, 0.0  ;;  %v944_v8 = vpop.f32.mrb[45].mxu1 }
 0x13b   :  { %v971_v9 = vmax.f32 %v944_v8, 0.0  ;;  %v1582_v10 = vpop.f32.mrb[46].mxu1 }
 0x13c   :  { %v974_v11 = vmax.f32 %v1582_v10, 0.0  ;;  %v947_v12 = vpop.f32.mrb[47].mxu1 }
 0x13d   :  { %1552 = vmatpush3.bf16.msra.mxu0 %v1956_v26  ;;  %v972_v13 = vmax.f32 %v947_v12, 0.0  ;;  %v1684_v26 = vld [vmem:[%s2045_s4 + $0x18] sm:$0xff]  }
 0x13e   :  { %1553 = vmatprep.subr.bf16.mxu0 %v1712_v39  ;;  %v982_v14 = vpack.c.bf16 %v974_v11, %v973_v7 }
 0x13f   :  { %v981_v15 = vpack.c.bf16 %v972_v13, %v971_v9 }
 0x141   :  { %1554 = vmatpush3.bf16.msra.mxu0 %v736_v35 }
 0x142   :  { %1555 = vmatprep.subr.bf16.mxu0 %v1712_v39 }
 0x145   :  { %1556 = vmatpush3.bf16.msra.mxu0 %v737_v34 }
 0x146   :  { %1583 = vmatprep.subr.bf16.mxu0 %v1712_v39 }
 0x148   :  { %1558 = vmatmul.mubr.bf16.vlgmr.msra.gmra.mrb[16].mxu0 %v1301_v18 }
 0x149   :  { %1584 = vmatpush3.bf16.msra.mxu0 %v975_v47  ;;  %1599 = vmatprep.mubr.msk.bf16.mxu0 %vm1713_vm3, %v1712_v39 }
 0x14a   :  { %1585 = vmatprep.subr.bf16.mxu0 %v1712_v39 }
 0x14d   :  { %1586 = vmatpush3.bf16.msra.mxu0 %v976_v46 }
 0x14e   :  { %1587 = vmatprep.subr.bf16.mxu0 %v1712_v39 }
 0x151   :  { %1588 = vmatpush3.bf16.msra.mxu0 %v977_v57 }
 0x152   :  { %1589 = vmatprep.subr.bf16.mxu0 %v1712_v39 }
 0x155   :  { %1590 = vmatpush3.bf16.msra.mxu0 %v978_v56 }
 0x156   :  { %1591 = vmatprep.subr.bf16.mxu0 %v1712_v39 }
 0x159   :  { %1592 = vmatpush3.bf16.msra.mxu0 %v979_v5 }
 0x15a   :  { %1593 = vmatprep.subr.bf16.mxu0 %v1712_v39 }
 0x15d   :  { %1594 = vmatpush3.bf16.msra.mxu0 %v980_v4 }
 0x15e   :  { %1595 = vmatprep.subr.bf16.mxu0 %v1712_v39 }
 0x161   :  { %1596 = vmatpush3.bf16.msra.mxu0 %v981_v15 }
 0x162   :  { %1597 = vmatprep.subr.bf16.mxu0 %v1712_v39 }
 0x165   :  { %1598 = vmatpush3.bf16.msra.mxu0 %v982_v14 }
 0x168   :  { %1600 = vmatmul.mubr.bf16.vlgmr.msra.gmra.mrb[16].mxu0 %v1334_v59 }
 0x23b   :  { %v1019_v19 = vpop.f32.mrb[16].mxu0 }
 0x23c   :  { %v1026_v21 = vpack.c.bf16 %v1019_v19, %v1019_v19  ;;  %v1601_v22 = vpop.f32.mrb[17].mxu0  ;;  %1194 = vrot.lane.b32.xlu0 %v1019_v19, %s1714_s23 }
 0x23d   :  { %v1022_v23 = vpop.f32.mrb[18].mxu0 }
 0x23e   :  { %v1602_v24 = vpop.f32.mrb[19].mxu0  ;;  %1608 = vmatmul.mubr.msk.bf16.vlgmr.msra.gmra.mrb[48].mxu1 %vm1049_vm4, %v1026_v21 }
 0x23f   :  { %1612 = vmatpush3.bf16.msra.mxu1 %v1681_v20  ;;  %1623 = vmatprep.mubr.msk.bf16.mxu1 %vm1713_vm3, %v1712_v39 }
 0x240   :  { %1613 = vmatprep.subr.bf16.mxu1 %v1712_v39 }
 0x243   :  { %1614 = vmatpush3.bf16.msra.mxu1 %v1682_v25 }
 0x244   :  { %1615 = vmatprep.subr.bf16.mxu1 %v1712_v39 }
 0x247   :  { %1616 = vmatpush3.bf16.msra.mxu1 %v1683_v58 }
 0x248   :  { %1617 = vmatprep.subr.bf16.mxu1 %v1712_v39 }
 0x24b   :  { %1618 = vmatpush3.bf16.msra.mxu1 %v1684_v26 }
 0x24c   :  { %1619 = vmatprep.subr.bf16.mxu1 %v1712_v39 }
 0x24f   :  { %1620 = vmatpush3.bf16.msra.mxu1 %v1685_v27 }
 0x250   :  { %1621 = vmatprep.subr.bf16.mxu1 %v1712_v39 }
 0x253   :  { %1622 = vmatpush3.bf16.msra.mxu1 %v1686_v17 }
 0x2ae   :  { %v1195_v47 = vpop.permute.xlu0 %1194 }
 0x311   :  { %v1087_v16 = vpop.f32.mrb[48].mxu1 }
 0x312   :  { %v1088_v34 = vadd.f32 %v1087_v16, %v1036_v33  ;;  %v1609_v35 = vpop.f32.mrb[49].mxu1 }
 0x313   :  { %v1090_v38 = vpop.f32.mrb[50].mxu1 }
 0x314   :  { %v1093_v37 = vmax.f32 %v1088_v34, 0.0  ;;  %v1610_v39 = vpop.f32.mrb[51].mxu1 }
 0x316   :  { %v1094_v40 = vpack.c.bf16 %v1093_v37, %v1093_v37 }
 0x318   :  { %1624 = vmatmul.mubr.msk.bf16.vlgmr.msra.gmra.mrb[52].mxu1 %vm1149_vm5, %v1094_v40 }
 0x3eb   :  { %v1187_v44 = vpop.f32.mrb[52].mxu1 }
 0x3ec   :  { %v1188_v36 = vadd.f32 %v1187_v44, %v1112_v43  ;;  %v1625_v45 = vpop.f32.mrb[53].mxu1 }
 0x3ed   :  { %v1190_v46 = vpop.f32.mrb[54].mxu1 }
 0x3ee   :  { %v1198_v48 = vsel %vm1197_vm6, %v1188_v36, 0.0  ;;  %v1626_v49 = vpop.f32.mrb[55].mxu1 }
 0x3ef   :  { %v1200_v50 = vsel %vm1199_vm7, %v1198_v48, %v1195_v47 }
 0x3f0   :  { %v1201_v51 = vsel %vm1149_vm5, %v1200_v50, 0.0 }
 0x3f1   :  { %1202 = vst [vmem:[#allocation2] sm:$0x3] %v1201_v51 }
 0x3f2   :  { %1698 = shalt.err (!%p1695_p4)
}
 0x3f3   :  { %s1699_s13 = scalar_lea.hbm %s2046_s5, 32 }
 0x3f4   :  { %p1700_p5 = scmp.ne.s32.totalorder %s2046_s5, %s1699_s13  ;;  %p1703_p6 = scmp.lt.u32.totalorder %s1699_s13, %s2046_s5 }
 0x3f6   :  { %p1705_p7 = pnand %p1703_p6, %p1700_p5 }
 0x3f8   :  { %1708 = shalt.err (!%p1705_p7)
}
 0x3f9   :  { %1212 = dma.vmem_to_hbm [thread:$0]  %s1210_s10, 32, %s2046_s5, [#allocation3]  }
 0x3fa   :  { %1709 = dma.done.wait [#allocation3], 32  }
 0x3fb   :  { %1710 = vsyncadd [#allocation3], 4294967264 }
 0x3fc   :  { %1216 = vsyncpa [#allocation3], 1 }

</bundles_post_ra>
